<compile_context>
chip_gen: v7x
topology: tpu7x:2x2x1
jax: 0.10.0
libtpu: 0.0.40
codegen_flags: <defaults>
</compile_context>

<pallas_src>
import jax
import jax.numpy as jnp
from jax.experimental import pallas as pl
from jax.experimental.pallas import tpu as pltpu

WEIGHT_DTYPE = jnp.bfloat16   # MXU-input dtype for the matmul weights.
LANE = 128                    # lane width (last-dim tiling)
SUBLANE = 8                   # f32 sublane (second-minor tiling)
KPAD = 16                     # layer-1 contraction pad (bf16 sublane packing)
MAX_TILE_B = 512              # batch-tile cap (amortizes ~0.35us/step overhead)


def _round_up(x, m):
    return (x + m - 1) // m * m


def critic_kernel(g_ref, s_ref, a_ref,
                  w1g_ref, w1s_ref, b1_ref, wa_ref, ba_ref,
                  w2s_ref, w2a_ref, w3_ref, o_ref):
    """One batch tile of the full Critic forward (all three layers fused)."""
    wdt = w1g_ref.dtype   # bf16 MXU inputs; accumulation stays f32.

    # fcs1 on cat(goal, state): two matmuls, no concat materialized.
    xs = jnp.dot(g_ref[...].astype(wdt), w1g_ref[...],
                 preferred_element_type=jnp.float32)
    xs = xs + jnp.dot(s_ref[...].astype(wdt), w1s_ref[...],
                      preferred_element_type=jnp.float32)
    # fca1 on action.
    xa = jnp.dot(a_ref[...].astype(wdt), wa_ref[...],
                 preferred_element_type=jnp.float32)
    # f32 VPU epilogues (bias + ReLU).
    xs = jnp.maximum(xs + b1_ref[...], 0.0)
    xa = jnp.maximum(xa + ba_ref[...], 0.0)

    # fc2 (no bias): cat(xs, xa) @ W2 == xs @ W2s + xa @ W2a (exact split).
    h = jnp.dot(xs.astype(wdt), w2s_ref[...], preferred_element_type=jnp.float32)
    h = h + jnp.dot(xa.astype(wdt), w2a_ref[...], preferred_element_type=jnp.float32)
    h = jnp.maximum(h, 0.0)

    # fc3 (no bias, N=1): broadcast multiply + cross-lane reduce (VPU/XLU, f32)
    # instead of wasting 127 MXU output columns on a 1-column matmul.
    o_ref[...] = jnp.sum(h * w3_ref[...], axis=-1, keepdims=True)


def pack_params(params, goal_features):
    """One-time weight preprocessing (split / zero-pad / cast).

    Doing this once at init removes ~1-2 MB of per-call XLA pad traffic that
    previously ran before every kernel launch.  All padding is with zeros, so
    the result is numerically exact.
    """
    w1, b1 = params["w1"], params["b1"]
    wa, ba = params["wa"], params["ba"]
    w2, w3 = params["w2"], params["w3"]

    g_in = goal_features
    s_in = w1.shape[0] - g_in
    a_in = wa.shape[0]
    f1, f2 = w1.shape[1], wa.shape[1]

    g_pad = _round_up(g_in, KPAD)
    s_pad = _round_up(s_in, KPAD)
    a_pad = _round_up(a_in, KPAD)
    f1_pad = _round_up(f1, LANE)
    f2_pad = _round_up(f2, LANE)

    def padw(x, rows, cols, dtype):
        x = jnp.asarray(x, jnp.float32)
        x = jnp.pad(x, ((0, rows - x.shape[0]), (0, cols - x.shape[1])))
        return x.astype(dtype)

    packed = {
        # fcs1 split into goal-part / state-part (removes the goal/state cat).
        "w1g": padw(w1[:g_in], g_pad, f1_pad, WEIGHT_DTYPE),
        "w1s": padw(w1[g_in:], s_pad, f1_pad, WEIGHT_DTYPE),
        "b1":  padw(b1.reshape(1, -1), 1, f1_pad, jnp.float32),
        "wa":  padw(wa, a_pad, f2_pad, WEIGHT_DTYPE),
        "ba":  padw(ba.reshape(1, -1), 1, f2_pad, jnp.float32),
        # fc2 split into xs-part / xa-part (removes the xs/xa cat).
        "w2s": padw(w2[:f1], f1_pad, f2_pad, WEIGHT_DTYPE),
        "w2a": padw(w2[f1:], f2_pad, f2_pad, WEIGHT_DTYPE),
        # fc3 column stored as an f32 row (consumed on the VPU, not the MXU).
        "w3":  padw(w3.reshape(1, -1), 1, f2_pad, jnp.float32),
    }
    meta = {"goal_features": g_in}
    return packed, meta


@jax.jit
def _critic_forward(goal, state, action,
                    w1g, w1s, b1, wa, ba, w2s, w2a, w3):
    batch = state.shape[0]
    g_pad, f1_pad = w1g.shape
    s_pad = w1s.shape[0]
    a_pad, f2_pad = wa.shape

    # Batch tiling: multiple of the f32 sublane (8).  Large batches get big
    # tiles (up to 512 rows) to amortize per-step overhead, but at least two
    # tiles so the "parallel" axis can split across v7x's two TensorCores.
    if batch <= 2 * SUBLANE:
        tile_b = _round_up(batch, SUBLANE)
    else:
        tile_b = min(MAX_TILE_B, _round_up(pl.cdiv(batch, 2), SUBLANE))
    b_pad = _round_up(batch, tile_b)
    n_tiles = b_pad // tile_b

    def pad_act(x, rows, cols):
        x = x.astype(jnp.float32)
        return jnp.pad(x, ((0, rows - x.shape[0]), (0, cols - x.shape[1])))

    goal_p = pad_act(goal, b_pad, g_pad)
    state_p = pad_act(state, b_pad, s_pad)
    action_p = pad_act(action, b_pad, a_pad)

    # Activations: tiled along batch (auto double-buffered).  Weights/biases:
    # constant index_map -> stay resident in VMEM across all batch tiles.
    act_spec = lambda cols: pl.BlockSpec((tile_b, cols), lambda b: (b, 0))
    res_spec = lambda shape: pl.BlockSpec(shape, lambda b: (0, 0))

    wbytes = jnp.dtype(WEIGHT_DTYPE).itemsize
    flops = 2 * b_pad * ((g_pad + s_pad) * f1_pad + a_pad * f2_pad
                         + (f1_pad + f2_pad) * f2_pad + f2_pad)
    bytes_accessed = (
        4 * b_pad * (g_pad + s_pad + a_pad + 1)
        + wbytes * ((g_pad + s_pad) * f1_pad + a_pad * f2_pad
                    + (f1_pad + f2_pad) * f2_pad)
        + 4 * (f1_pad + 2 * f2_pad))

    out = pl.pallas_call(
        critic_kernel,
        out_shape=jax.ShapeDtypeStruct((b_pad, 1), jnp.float32),
        grid=(n_tiles,),
        in_specs=[
            act_spec(g_pad),                  # goal tile
            act_spec(s_pad),                  # state tile
            act_spec(a_pad),                  # action tile
            res_spec((g_pad, f1_pad)),        # W1 (goal part)   -- resident
            res_spec((s_pad, f1_pad)),        # W1 (state part)  -- resident
            res_spec((1, f1_pad)),            # b1
            res_spec((a_pad, f2_pad)),        # Wa
            res_spec((1, f2_pad)),            # ba
            res_spec((f1_pad, f2_pad)),       # W2 (xs part)
            res_spec((f2_pad, f2_pad)),       # W2 (xa part)
            res_spec((1, f2_pad)),            # w3 row (f32)
        ],
        out_specs=pl.BlockSpec((tile_b, 1), lambda b: (b, 0)),
        compiler_params=pltpu.CompilerParams(
            dimension_semantics=("parallel",)),
        cost_estimate=pl.CostEstimate(
            flops=flops, transcendentals=0, bytes_accessed=bytes_accessed),
    )(goal_p, state_p, action_p, w1g, w1s, b1, wa, ba, w2s, w2a, w3)

    return out[:batch]


def critic_forward(goal, state, action, packed, meta):
    """Pallas implementation of Critic.forward (wrap_value == identity)."""
    g_in = meta["goal_features"]
    if goal.ndim == state.ndim:
        g, s = goal, state
    else:
        # In this branch the module feeds `state` alone to fcs1, i.e. state
        # already carries the goal features in its leading columns; split it
        # so the same W1g/W1s kernel path applies (algebraically identical).
        g, s = state[..., :g_in], state[..., g_in:]
    return _critic_forward(g, s, action,
                           packed["w1g"], packed["w1s"], packed["b1"],
                           packed["wa"], packed["ba"],
                           packed["w2s"], packed["w2a"], packed["w3"])


def init_params(key, state_size, action_size, her_features,
                fcs1_units=400, fc2_units=300):
    """Deterministic init mirroring the PyTorch module's shapes.

    Weights: kaiming_uniform (bound = sqrt(6 / fan_in)), as in initialize_weights.
    Biases : PyTorch Linear default, uniform(-1/sqrt(fan_in), 1/sqrt(fan_in)).
    Stored transposed: [in_features, out_features]; w3 is [fc2_units, 1].
    """
    s_in = state_size + her_features
    ks = jax.random.split(key, 6)

    def kaiming(k, fan_in, fan_out):
        bound = jnp.sqrt(6.0 / fan_in)
        return jax.random.uniform(k, (fan_in, fan_out), jnp.float32,
                                  minval=-bound, maxval=bound)

    def bias(k, fan_in, n):
        bound = 1.0 / jnp.sqrt(fan_in)
        return jax.random.uniform(k, (n,), jnp.float32,
                                  minval=-bound, maxval=bound)

    return {
        "w1": kaiming(ks[0], s_in, fcs1_units),
        "b1": bias(ks[1], s_in, fcs1_units),
        "wa": kaiming(ks[2], action_size, fc2_units),
        "ba": bias(ks[3], action_size, fc2_units),
        "w2": kaiming(ks[4], fcs1_units + fc2_units, fc2_units),   # bias=False
        "w3": kaiming(ks[5], fc2_units, 1),                        # bias=False
    }


def critic_reference_f32(goal, state, action, params):
    """Pure-JAX f32 reference (matches the PyTorch module exactly)."""
    if goal.ndim == state.ndim:
        state = jnp.concatenate([goal, state], axis=-1)
    xs = jax.nn.relu(state @ params["w1"] + params["b1"])
    xa = jax.nn.relu(action @ params["wa"] + params["ba"])
    x = jnp.concatenate([xs, xa], axis=1)
    x = jax.nn.relu(x @ params["w2"])
    return x @ params["w3"]


def critic_reference_quantized(goal, state, action, params):
    """Same forward with the kernel's bf16 MXU-input quantization and f32
    accumulation — tight check of the kernel's algebra."""
    wdt = WEIGHT_DTYPE

    def mm(x, w):
        return jnp.dot(x.astype(wdt), w.astype(wdt),
                       preferred_element_type=jnp.float32)

    if goal.ndim == state.ndim:
        state = jnp.concatenate([goal, state], axis=-1)
    xs = jax.nn.relu(mm(state, params["w1"]) + params["b1"])
    xa = jax.nn.relu(mm(action, params["wa"]) + params["ba"])
    x = jnp.concatenate([xs, xa], axis=1)
    x = jax.nn.relu(mm(x, params["w2"]))
    return x @ params["w3"]          # fc3 stays f32 (VPU path in the kernel)


if __name__ == "__main__":
    # Small, module-consistent shapes.
    batch = 4
    state_size = 16
    her_features = 4          # cfg['her_state_features']
    action_size = 6
    fcs1_units, fc2_units = 64, 32

    key = jax.random.PRNGKey(0)
    kp, kg, ks_, ka = jax.random.split(key, 4)

    params = init_params(kp, state_size, action_size, her_features,
                         fcs1_units, fc2_units)
    packed, meta = pack_params(params, her_features)   # one-time, off hot path

    goal = jax.random.normal(kg, (batch, her_features), jnp.float32)
    state = jax.random.normal(ks_, (batch, state_size), jnp.float32)
    action = jax.random.normal(ka, (batch, action_size), jnp.float32)

    out = critic_forward(goal, state, action, packed, meta)
    out = jax.block_until_ready(out)
    assert out.shape == (batch, 1), out.shape

    # Tight check against a reference that applies the same bf16 quantization
    # of the MXU inputs (verifies the kernel algebra: splits, padding, fusion).
    ref_q = critic_reference_quantized(goal, state, action, params)
    assert jnp.allclose(out, ref_q, atol=1e-3, rtol=1e-3), (out, ref_q)

    # Sanity check against the exact f32 module semantics (bf16 weights only
    # introduce ~0.5% quantization noise).
    ref_f = critic_reference_f32(goal, state, action, params)
    err = float(jnp.linalg.norm(out - ref_f))
    assert err <= 0.05 * float(jnp.linalg.norm(ref_f)) + 0.1, (err, out, ref_f)

    print("KERNEL_OK")
</pallas_src>

<mosaic_0001>
module attributes {stable_mosaic.version = 11 : i64} {
  func.func @critic_kernel(%arg0: i32, %arg1: memref<8x16xf32, #tpu.memory_space<vmem>>, %arg2: memref<8x16xf32, #tpu.memory_space<vmem>>, %arg3: memref<8x16xf32, #tpu.memory_space<vmem>>, %arg4: memref<16x128xbf16, #tpu.memory_space<vmem>>, %arg5: memref<16x128xbf16, #tpu.memory_space<vmem>>, %arg6: memref<1x128xf32, #tpu.memory_space<vmem>>, %arg7: memref<16x128xbf16, #tpu.memory_space<vmem>>, %arg8: memref<1x128xf32, #tpu.memory_space<vmem>>, %arg9: memref<128x128xbf16, #tpu.memory_space<vmem>>, %arg10: memref<128x128xbf16, #tpu.memory_space<vmem>>, %arg11: memref<1x128xf32, #tpu.memory_space<vmem>>, %arg12: memref<8x1xf32, #tpu.memory_space<vmem>>) attributes {dimension_semantics = [#tpu.dimension_semantics<parallel>], iteration_bounds = array<i64: 1>, scalar_prefetch = 0 : i64, scratch_operands = 0 : i64, tpu.core_type = #tpu.core_type<tc>, window_params = [{transform_indices = @transform_0, window_bounds = array<i64: 8, 16>}, {transform_indices = @transform_1, window_bounds = array<i64: 8, 16>}, {transform_indices = @transform_2, window_bounds = array<i64: 8, 16>}, {pipeline_mode = #tpu.pipeline_mode<synchronous>, transform_indices = @transform_3, window_bounds = array<i64: 16, 128>}, {pipeline_mode = #tpu.pipeline_mode<synchronous>, transform_indices = @transform_4, window_bounds = array<i64: 16, 128>}, {pipeline_mode = #tpu.pipeline_mode<synchronous>, transform_indices = @transform_5, window_bounds = array<i64: 1, 128>}, {pipeline_mode = #tpu.pipeline_mode<synchronous>, transform_indices = @transform_6, window_bounds = array<i64: 16, 128>}, {pipeline_mode = #tpu.pipeline_mode<synchronous>, transform_indices = @transform_7, window_bounds = array<i64: 1, 128>}, {pipeline_mode = #tpu.pipeline_mode<synchronous>, transform_indices = @transform_8, window_bounds = array<i64: 128, 128>}, {pipeline_mode = #tpu.pipeline_mode<synchronous>, transform_indices = @transform_9, window_bounds = array<i64: 128, 128>}, {pipeline_mode = #tpu.pipeline_mode<synchronous>, transform_indices = @transform_10, window_bounds = array<i64: 1, 128>}, {transform_indices = @transform_11, window_bounds = array<i64: 8, 1>}]} {
    %c0 = arith.constant 0 : index
    %c0_0 = arith.constant 0 : index
    %0 = vector.load %arg1[%c0, %c0_0] : memref<8x16xf32, #tpu.memory_space<vmem>>, vector<8x16xf32>
    %1 = arith.truncf %0 : vector<8x16xf32> to vector<8x16xbf16>
    %c0_1 = arith.constant 0 : index
    %c0_2 = arith.constant 0 : index
    %2 = vector.load %arg4[%c0_1, %c0_2] : memref<16x128xbf16, #tpu.memory_space<vmem>>, vector<16x128xbf16>
    %cst = arith.constant dense<0.000000e+00> : vector<8x128xf32>
    %3 = tpu.matmul %1, %2, %cst {dimension_numbers = #tpu.dot_dimension_numbers<[1], [0], [0], [1], [0, 0, 1, 1], [], []>} : vector<8x16xbf16>, vector<16x128xbf16>, vector<8x128xf32> -> vector<8x128xf32>
    %c0_3 = arith.constant 0 : index
    %c0_4 = arith.constant 0 : index
    %4 = vector.load %arg2[%c0_3, %c0_4] : memref<8x16xf32, #tpu.memory_space<vmem>>, vector<8x16xf32>
    %5 = arith.truncf %4 : vector<8x16xf32> to vector<8x16xbf16>
    %c0_5 = arith.constant 0 : index
    %c0_6 = arith.constant 0 : index
    %6 = vector.load %arg5[%c0_5, %c0_6] : memref<16x128xbf16, #tpu.memory_space<vmem>>, vector<16x128xbf16>
    %cst_7 = arith.constant dense<0.000000e+00> : vector<8x128xf32>
    %7 = tpu.matmul %5, %6, %cst_7 {dimension_numbers = #tpu.dot_dimension_numbers<[1], [0], [0], [1], [0, 0, 1, 1], [], []>} : vector<8x16xbf16>, vector<16x128xbf16>, vector<8x128xf32> -> vector<8x128xf32>
    %8 = arith.addf %3, %7 : vector<8x128xf32>
    %c0_8 = arith.constant 0 : index
    %c0_9 = arith.constant 0 : index
    %9 = vector.load %arg3[%c0_8, %c0_9] : memref<8x16xf32, #tpu.memory_space<vmem>>, vector<8x16xf32>
    %10 = arith.truncf %9 : vector<8x16xf32> to vector<8x16xbf16>
    %c0_10 = arith.constant 0 : index
    %c0_11 = arith.constant 0 : index
    %11 = vector.load %arg7[%c0_10, %c0_11] : memref<16x128xbf16, #tpu.memory_space<vmem>>, vector<16x128xbf16>
    %cst_12 = arith.constant dense<0.000000e+00> : vector<8x128xf32>
    %12 = tpu.matmul %10, %11, %cst_12 {dimension_numbers = #tpu.dot_dimension_numbers<[1], [0], [0], [1], [0, 0, 1, 1], [], []>} : vector<8x16xbf16>, vector<16x128xbf16>, vector<8x128xf32> -> vector<8x128xf32>
    %c0_13 = arith.constant 0 : index
    %c0_14 = arith.constant 0 : index
    %13 = vector.load %arg6[%c0_13, %c0_14] : memref<1x128xf32, #tpu.memory_space<vmem>>, vector<1x128xf32>
    %14 = vector.broadcast %13 : vector<1x128xf32> to vector<8x128xf32>
    %15 = arith.addf %8, %14 : vector<8x128xf32>
    %cst_15 = arith.constant 0.000000e+00 : f32
    %16 = vector.broadcast %cst_15 : f32 to vector<8x128xf32>
    %17 = arith.maximumf %15, %16 : vector<8x128xf32>
    %c0_16 = arith.constant 0 : index
    %c0_17 = arith.constant 0 : index
    %18 = vector.load %arg8[%c0_16, %c0_17] : memref<1x128xf32, #tpu.memory_space<vmem>>, vector<1x128xf32>
    %19 = vector.broadcast %18 : vector<1x128xf32> to vector<8x128xf32>
    %20 = arith.addf %12, %19 : vector<8x128xf32>
    %cst_18 = arith.constant 0.000000e+00 : f32
    %21 = vector.broadcast %cst_18 : f32 to vector<8x128xf32>
    %22 = arith.maximumf %20, %21 : vector<8x128xf32>
    %23 = arith.truncf %17 : vector<8x128xf32> to vector<8x128xbf16>
    %c0_19 = arith.constant 0 : index
    %c0_20 = arith.constant 0 : index
    %24 = vector.load %arg9[%c0_19, %c0_20] : memref<128x128xbf16, #tpu.memory_space<vmem>>, vector<128x128xbf16>
    %cst_21 = arith.constant dense<0.000000e+00> : vector<8x128xf32>
    %25 = tpu.matmul %23, %24, %cst_21 {dimension_numbers = #tpu.dot_dimension_numbers<[1], [0], [0], [1], [0, 0, 1, 1], [], []>} : vector<8x128xbf16>, vector<128x128xbf16>, vector<8x128xf32> -> vector<8x128xf32>
    %26 = arith.truncf %22 : vector<8x128xf32> to vector<8x128xbf16>
    %c0_22 = arith.constant 0 : index
    %c0_23 = arith.constant 0 : index
    %27 = vector.load %arg10[%c0_22, %c0_23] : memref<128x128xbf16, #tpu.memory_space<vmem>>, vector<128x128xbf16>
    %cst_24 = arith.constant dense<0.000000e+00> : vector<8x128xf32>
    %28 = tpu.matmul %26, %27, %cst_24 {dimension_numbers = #tpu.dot_dimension_numbers<[1], [0], [0], [1], [0, 0, 1, 1], [], []>} : vector<8x128xbf16>, vector<128x128xbf16>, vector<8x128xf32> -> vector<8x128xf32>
    %29 = arith.addf %25, %28 : vector<8x128xf32>
    %cst_25 = arith.constant 0.000000e+00 : f32
    %30 = vector.broadcast %cst_25 : f32 to vector<8x128xf32>
    %31 = arith.maximumf %29, %30 : vector<8x128xf32>
    %c0_26 = arith.constant 0 : index
    %c0_27 = arith.constant 0 : index
    %32 = vector.load %arg11[%c0_26, %c0_27] : memref<1x128xf32, #tpu.memory_space<vmem>>, vector<1x128xf32>
    %33 = vector.broadcast %32 : vector<1x128xf32> to vector<8x128xf32>
    %34 = arith.mulf %31, %33 : vector<8x128xf32>
    %cst_28 = arith.constant dense<0.000000e+00> : vector<8xf32>
    %35 = vector.multi_reduction <add>, %34, %cst_28 [1] : vector<8x128xf32> to vector<8xf32>
    %36 = vector.shape_cast %35 : vector<8xf32> to vector<8x1xf32>
    %c0_29 = arith.constant 0 : index
    %c0_30 = arith.constant 0 : index
    %37 = vector.load %arg12[%c0_29, %c0_30] : memref<8x1xf32, #tpu.memory_space<vmem>>, vector<8x1xf32>
    tpu.vector_store %arg12[%c0_29, %c0_30], %36 {strides = array<i32>} : memref<8x1xf32, #tpu.memory_space<vmem>>, vector<8x1xf32>,
    return
  }
  func.func @transform_0(%arg0: i32) -> (i32, i32) {
    %c0_i32 = arith.constant 0 : i32
    %c0_i32_0 = arith.constant 0 : i32
    return %arg0, %c0_i32 : i32, i32
  }
  func.func @transform_1(%arg0: i32) -> (i32, i32) {
    %c0_i32 = arith.constant 0 : i32
    %c0_i32_0 = arith.constant 0 : i32
    return %arg0, %c0_i32 : i32, i32
  }
  func.func @transform_2(%arg0: i32) -> (i32, i32) {
    %c0_i32 = arith.constant 0 : i32
    %c0_i32_0 = arith.constant 0 : i32
    return %arg0, %c0_i32 : i32, i32
  }
  func.func @transform_3(%arg0: i32) -> (i32, i32) {
    %c0_i32 = arith.constant 0 : i32
    %c0_i32_0 = arith.constant 0 : i32
    %c0_i32_1 = arith.constant 0 : i32
    return %c0_i32, %c0_i32_0 : i32, i32
  }
  func.func @transform_4(%arg0: i32) -> (i32, i32) {
    %c0_i32 = arith.constant 0 : i32
    %c0_i32_0 = arith.constant 0 : i32
    %c0_i32_1 = arith.constant 0 : i32
    return %c0_i32, %c0_i32_0 : i32, i32
  }
  func.func @transform_5(%arg0: i32) -> (i32, i32) {
    %c0_i32 = arith.constant 0 : i32
    %c0_i32_0 = arith.constant 0 : i32
    %c0_i32_1 = arith.constant 0 : i32
    return %c0_i32, %c0_i32_0 : i32, i32
  }
  func.func @transform_6(%arg0: i32) -> (i32, i32) {
    %c0_i32 = arith.constant 0 : i32
    %c0_i32_0 = arith.constant 0 : i32
    %c0_i32_1 = arith.constant 0 : i32
    return %c0_i32, %c0_i32_0 : i32, i32
  }
  func.func @transform_7(%arg0: i32) -> (i32, i32) {
    %c0_i32 = arith.constant 0 : i32
    %c0_i32_0 = arith.constant 0 : i32
    %c0_i32_1 = arith.constant 0 : i32
    return %c0_i32, %c0_i32_0 : i32, i32
  }
  func.func @transform_8(%arg0: i32) -> (i32, i32) {
    %c0_i32 = arith.constant 0 : i32
    %c0_i32_0 = arith.constant 0 : i32
    %c0_i32_1 = arith.constant 0 : i32
    return %c0_i32, %c0_i32_0 : i32, i32
  }
  func.func @transform_9(%arg0: i32) -> (i32, i32) {
    %c0_i32 = arith.constant 0 : i32
    %c0_i32_0 = arith.constant 0 : i32
    %c0_i32_1 = arith.constant 0 : i32
    return %c0_i32, %c0_i32_0 : i32, i32
  }
  func.func @transform_10(%arg0: i32) -> (i32, i32) {
    %c0_i32 = arith.constant 0 : i32
    %c0_i32_0 = arith.constant 0 : i32
    %c0_i32_1 = arith.constant 0 : i32
    return %c0_i32, %c0_i32_0 : i32, i32
  }
  func.func @transform_11(%arg0: i32) -> (i32, i32) {
    %c0_i32 = arith.constant 0 : i32
    %c0_i32_0 = arith.constant 0 : i32
    return %arg0, %c0_i32 : i32, i32
  }
}

</mosaic_0001>

<bundles_post_ra>
// kernel: _critic_forward.1
= control target key start
LH: loop header
LB: loop body
LE: loop exit
PB: predicated region body
PF: predicated region fallthrough
CT: control target
= control target key end

     0   :  { %16 = vsyncpa [#allocation3], 0  ;;  %s949_s0 = inlined_call_operand.vmem [shape: f32[8,16], index: 0, kind: input, shape index: {}]   ;;  %s950_s1 = inlined_call_operand.vmem [shape: f32[8,16], index: 1, kind: input, shape index: {}]   ;;  %s951_s2 = inlined_call_operand.vmem [shape: f32[8,16], index: 2, kind: input, shape index: {}]   ;;  %s952_s3 = inlined_call_operand.hbm [shape: bf16[16,128], index: 3, kind: input, shape index: {}]   ;;  %s953_s4 = inlined_call_operand.hbm [shape: bf16[16,128], index: 4, kind: input, shape index: {}]   ;;  %s954_s5 = inlined_call_operand.vmem [shape: f32[1,128], index: 5, kind: input, shape index: {}]   ;;  %s955_s6 = inlined_call_operand.hbm [shape: bf16[16,128], index: 6, kind: input, shape index: {}]   ;;  %s956_s7 = inlined_call_operand.vmem [shape: f32[1,128], index: 7, kind: input, shape index: {}]   ;;  %s957_s8 = inlined_call_operand.vmem [shape: bf16[128,128], index: 8, kind: input, shape index: {}]   ;;  %s958_s9 = inlined_call_operand.hbm [shape: bf16[128,128], index: 9, kind: input, shape index: {}]   ;;  %s959_s10 = inlined_call_operand.vmem [shape: f32[1,128], index: 10, kind: input, shape index: {}]   ;;  %s960_s11 = inlined_call_operand.vmem [shape: f32[8,1], index: 11, kind: output, shape index: {}]  }
   0x1   :  { %17 = vsyncpa [#allocation5], 0 }
   0x2   :  { %18 = vsyncpa [#allocation8], 0  ;;  %s730_s17 = smov [#allocation4]   ;;  %s731_s19 = smov [#allocation2]  }
   0x3   :  { %s42_s18 = sshll.u32 %s730_s17, 4  ;;  %s30_s20 = sshll.u32 %s731_s19, 4  ;;  %s43_s18 = int_to_ptr.vmem [resolvable:$true] %s42_s18  ;;  %s798_s20 = int_to_ptr.vmem [resolvable:$true] %s30_s20 }
   0x4   :  { %s636_s23 = scalar_lea.hbm %s953_s4, 128 }
   0x5   :  { %p637_p0 = scmp.ne.s32.totalorder %s953_s4, %s636_s23  ;;  %p640_p1 = scmp.lt.u32.totalorder %s636_s23, %s953_s4 }
   0x7   :  { %p642_p2 = pnand %p640_p1, %p637_p0 }
   0x9   :  { %645 = shalt.err (!%p642_p2)
}
   0xa   :  { %s646_s28 = scalar_lea.vmem %s43_s18, 128  ;;  %p651_p4 = scmp.lt.s32.totalorder %s43_s18, %s43_s18 }
   0xb   :  { %p647_p3 = scmp.ne.s32.totalorder %s43_s18, %s646_s28  ;;  %p652_p5 = scmp.lt.s32.totalorder %s646_s28, %s646_s28 }
   0xd   :  { %p653_p6 = por %p652_p5, %p651_p4 }
   0xf   :  { %p654_p7 = pnand %p653_p6, %p647_p3 }
  0x11   :  { %657 = shalt.err (!%p654_p7)
}
  0x12   :  { %s732_s29 = smov 64   ;;  %s733_s30 = smov 4  }
  0x13   :  { %48 = dma.hbm_to_vmem [thread:$0]  %s953_s4, 128, %s43_s18, [#allocation5], %s732_s29, %s732_s29, %s733_s30  }
  0x14   :  { %s658_s16 = scalar_lea.hbm %s952_s3, 128 }
  0x15   :  { %p659_p8 = scmp.ne.s32.totalorder %s952_s3, %s658_s16  ;;  %p662_p9 = scmp.lt.u32.totalorder %s658_s16, %s952_s3 }
  0x17   :  { %p664_p10 = pnand %p662_p9, %p659_p8 }
  0x19   :  { %667 = shalt.err (!%p664_p10)
}
  0x1a   :  { %s668_s23 = scalar_lea.vmem %s798_s20, 128  ;;  %p673_p12 = scmp.lt.s32.totalorder %s798_s20, %s798_s20 }
  0x1b   :  { %p669_p11 = scmp.ne.s32.totalorder %s798_s20, %s668_s23  ;;  %p674_p13 = scmp.lt.s32.totalorder %s668_s23, %s668_s23 }
  0x1d   :  { %p675_p0 = por %p674_p13, %p673_p12 }
  0x1f   :  { %p676_p1 = pnand %p675_p0, %p669_p11 }
  0x21   :  { %679 = shalt.err (!%p676_p1)
}
  0x22   :  { %36 = dma.hbm_to_vmem [thread:$0]  %s952_s3, 128, %s798_s20, [#allocation3], %s732_s29, %s732_s29, %s733_s30  }
  0x23   :  { %s734_s24 = smov [#allocation6]   ;;  %s735_s26 = smov [#allocation7]  }
  0x24   :  { %s56_s25 = sshll.u32 %s734_s24, 4  ;;  %s72_s27 = sshll.u32 %s735_s26, 4  ;;  %s57_s25 = int_to_ptr.vmem [resolvable:$true] %s56_s25  ;;  %s835_s27 = int_to_ptr.vmem [resolvable:$true] %s72_s27 }
  0x25   :  { %s680_s13 = scalar_lea.hbm %s955_s6, 128 }
  0x26   :  { %p681_p2 = scmp.ne.s32.totalorder %s955_s6, %s680_s13  ;;  %p684_p3 = scmp.lt.u32.totalorder %s680_s13, %s955_s6 }
  0x28   :  { %p686_p4 = pnand %p684_p3, %p681_p2 }
  0x2a   :  { %689 = shalt.err (!%p686_p4)
}
  0x2b   :  { %s690_s3 = scalar_lea.vmem %s57_s25, 128  ;;  %p695_p6 = scmp.lt.s32.totalorder %s57_s25, %s57_s25 }
  0x2c   :  { %p691_p5 = scmp.ne.s32.totalorder %s57_s25, %s690_s3  ;;  %p696_p7 = scmp.lt.s32.totalorder %s690_s3, %s690_s3 }
  0x2e   :  { %p697_p8 = por %p696_p7, %p695_p6 }
  0x30   :  { %p698_p9 = pnand %p697_p8, %p691_p5 }
  0x32   :  { %701 = shalt.err (!%p698_p9)
}
  0x33   :  { %62 = dma.hbm_to_vmem [thread:$0]  %s955_s6, 128, %s57_s25, [#allocation5], %s732_s29, %s732_s29, %s733_s30  }
  0x34   :  { %s702_s23 = scalar_lea.hbm %s958_s9, 1024 }
  0x35   :  { %p703_p10 = scmp.ne.s32.totalorder %s958_s9, %s702_s23  ;;  %p706_p11 = scmp.lt.u32.totalorder %s702_s23, %s958_s9 }
  0x37   :  { %p708_p12 = pnand %p706_p11, %p703_p10 }
  0x39   :  { %711 = shalt.err (!%p708_p12)
}
  0x3a   :  { %s712_s28 = scalar_lea.vmem %s835_s27, 1024  ;;  %p717_p0 = scmp.lt.s32.totalorder %s835_s27, %s835_s27 }
  0x3b   :  { %p713_p13 = scmp.ne.s32.totalorder %s835_s27, %s712_s28  ;;  %p718_p1 = scmp.lt.s32.totalorder %s712_s28, %s712_s28 }
  0x3d   :  { %p719_p2 = por %p718_p1, %p717_p0 }
  0x3f   :  { %p720_p3 = pnand %p719_p2, %p713_p13 }
  0x41   :  { %723 = shalt.err (!%p720_p3)
}
  0x42   :  { %78 = dma.hbm_to_vmem [thread:$0]  %s958_s9, 1024, %s835_s27, [#allocation8], %s732_s29, %s732_s29, %s733_s30  }
  0x43   :  { %724 = dma.done.wait [#allocation3], 128  }
  0x44   :  { %725 = vsyncadd [#allocation3], 4294967168 }
  0x45   :  { %726 = dma.done.wait [#allocation5], 256  }
  0x46   :  { %727 = vsyncadd [#allocation5], 4294967040 }
  0x47   :  { %728 = dma.done.wait [#allocation8], 1024  }
  0x48   :  { %729 = vsyncadd [#allocation8], 4294966272  ;;  %v736_v0 = vmov 0.0   ;;  %vm737_vm0 = vmmov 0   ;;  %v617_v1 = vld [vmem:[#allocation4] sm:$0xff]   ;;  %v618_v2 = vld [vmem:[#allocation2] sm:$0xff]  }
  0x49   :  { %550 = vmatprep.subr.bf16.mxu0 %v736_v0  ;;  %556 = vmatprep.subr.bf16.mxu1 %v736_v0  ;;  %v98_v3 = vld [vmem:[%s950_s1] sm:$0xff]  ;;  %vm108_vm1 = vcmask 130048   ;;  %v619_v7 = vld [vmem:[#allocation6] sm:$0xff]   ;;  %v621_v10 = vld [vmem:[%s957_s8 + $0x8] sm:$0xff]   ;;  %vm492_vm2 = vcmask 7168  }
  0x4a   :  { %552 = vmatprep.mubr.msk.bf16.mxu0 %vm737_vm0, %v736_v0  ;;  %558 = vmatprep.mubr.msk.bf16.mxu1 %vm737_vm0, %v736_v0  ;;  %v94_v4 = vld [vmem:[%s949_s0] sm:$0xff]  ;;  %v99_v5 = vpack.c.bf16 %v98_v3, %v98_v3  ;;  %v622_v12 = vld [vmem:[#allocation7] sm:$0xff]   ;;  %v623_v13 = vld [vmem:[%s957_s8 + $0x10] sm:$0xff]  }
  0x4b   :  { %551 = vmatpush3.bf16.msra.mxu0 %v617_v1  ;;  %557 = vmatpush3.bf16.msra.mxu1 %v618_v2  ;;  %v95_v6 = vpack.c.bf16 %v94_v4, %v94_v4  ;;  %v620_v8 = vld [vmem:[%s957_s8] sm:$0xff]   ;;  %v625_v15 = vld [vmem:[%s957_s8 + $0x18] sm:$0xff]   ;;  %v626_v16 = vld [vmem:[#allocation7 + $0x10] sm:$0xff]  }
  0x4c   :  { %562 = vmatprep.subr.bf16.mxu0 %v736_v0  ;;  %588 = vmatprep.subr.bf16.mxu1 %v736_v0  ;;  %v201_v9 = vld [vmem:[%s951_s2] sm:$0xff]  ;;  %v628_v18 = vld [vmem:[#allocation7 + $0x18] sm:$0xff]   ;;  %v629_v19 = vld [vmem:[%s957_s8 + $0x28] sm:$0xff]  }
  0x4d   :  { %v202_v11 = vpack.c.bf16 %v201_v9, %v201_v9  ;;  %v624_v14 = vld [vmem:[#allocation7 + $0x8] sm:$0xff]   ;;  %v630_v20 = vld [vmem:[#allocation7 + $0x20] sm:$0xff]   ;;  %v631_v21 = vld [vmem:[%s957_s8 + $0x30] sm:$0xff]  }
  0x4e   :  { %553 = vmatmul.mubr.msk.bf16.vlgmr.msra.gmra.mrb[0].mxu0 %vm108_vm1, %v99_v5  ;;  %559 = vmatmul.mubr.msk.bf16.vlgmr.msra.gmra.mrb[0].mxu1 %vm108_vm1, %v95_v6  ;;  %v627_v17 = vld [vmem:[%s957_s8 + $0x20] sm:$0xff]   ;;  %v633_v23 = vld [vmem:[%s957_s8 + $0x38] sm:$0xff]   ;;  %v634_v24 = vld [vmem:[#allocation7 + $0x30] sm:$0xff]  }
  0x4f   :  { %563 = vmatpush3.bf16.msra.mxu0 %v619_v7  ;;  %564 = vmatprep.mubr.msk.bf16.mxu0 %vm737_vm0, %v736_v0  ;;  %v632_v22 = vld [vmem:[#allocation7 + $0x28] sm:$0xff]   ;;  %v635_v25 = vld [vmem:[#allocation7 + $0x38] sm:$0xff]  }
  0x50   :  { %589 = vmatpush3.bf16.msra.mxu1 %v620_v8  ;;  %568 = vmatprep.subr.bf16.mxu0 %v736_v0  ;;  %v505_v28 = vld [vmem:[%s954_s5] ss:$0 sm:$0xff] }
  0x51   :  { %590 = vmatprep.subr.bf16.mxu1 %v736_v0  ;;  %604 = vmatprep.mubr.msk.bf16.mxu1 %vm737_vm0, %v736_v0  ;;  %v506_v38 = vld [vmem:[%s956_s7] ss:$0 sm:$0xff] }
  0x52   :  { %v525_v55 = vld [vmem:[%s959_s10] ss:$0 sm:$0xff] }
  0x54   :  { %591 = vmatpush3.bf16.msra.mxu1 %v621_v10 }
  0x55   :  { %592 = vmatprep.subr.bf16.mxu1 %v736_v0 }
  0x56   :  { %565 = vmatmul.mubr.msk.bf16.vlgmr.msra.gmra.mrb[4].mxu0 %vm108_vm1, %v202_v11 }
  0x57   :  { %569 = vmatpush3.bf16.msra.mxu0 %v622_v12  ;;  %584 = vmatprep.mubr.msk.bf16.mxu0 %vm737_vm0, %v736_v0 }
  0x58   :  { %593 = vmatpush3.bf16.msra.mxu1 %v623_v13  ;;  %570 = vmatprep.subr.bf16.mxu0 %v736_v0 }
  0x59   :  { %594 = vmatprep.subr.bf16.mxu1 %v736_v0 }
  0x5b   :  { %571 = vmatpush3.bf16.msra.mxu0 %v624_v14 }
  0x5c   :  { %595 = vmatpush3.bf16.msra.mxu1 %v625_v15  ;;  %572 = vmatprep.subr.bf16.mxu0 %v736_v0 }
  0x5d   :  { %596 = vmatprep.subr.bf16.mxu1 %v736_v0 }
  0x5f   :  { %573 = vmatpush3.bf16.msra.mxu0 %v626_v16 }
  0x60   :  { %597 = vmatpush3.bf16.msra.mxu1 %v627_v17  ;;  %574 = vmatprep.subr.bf16.mxu0 %v736_v0 }
  0x61   :  { %598 = vmatprep.subr.bf16.mxu1 %v736_v0 }
  0x63   :  { %575 = vmatpush3.bf16.msra.mxu0 %v628_v18 }
  0x64   :  { %599 = vmatpush3.bf16.msra.mxu1 %v629_v19  ;;  %576 = vmatprep.subr.bf16.mxu0 %v736_v0 }
  0x65   :  { %600 = vmatprep.subr.bf16.mxu1 %v736_v0 }
  0x67   :  { %577 = vmatpush3.bf16.msra.mxu0 %v630_v20 }
  0x68   :  { %578 = vmatprep.subr.bf16.mxu0 %v736_v0  ;;  %601 = vmatpush3.bf16.msra.mxu1 %v631_v21 }
  0x69   :  { %602 = vmatprep.subr.bf16.mxu1 %v736_v0 }
  0x6b   :  { %579 = vmatpush3.bf16.msra.mxu0 %v632_v22 }
  0x6c   :  { %580 = vmatprep.subr.bf16.mxu0 %v736_v0  ;;  %603 = vmatpush3.bf16.msra.mxu1 %v633_v23 }
  0x6f   :  { %581 = vmatpush3.bf16.msra.mxu0 %v634_v24 }
  0x70   :  { %582 = vmatprep.subr.bf16.mxu0 %v736_v0 }
  0x73   :  { %583 = vmatpush3.bf16.msra.mxu0 %v635_v25 }
 0x121   :  { %v146_v26 = vpop.f32.mrb[0].mxu0  ;;  %v195_v27 = vpop.f32.mrb[0].mxu1 }
 0x122   :  { %v554_v29 = vpop.f32.mrb[1].mxu0  ;;  %v196_v30 = vadd.f32 %v195_v27, %v146_v26  ;;  %v560_v32 = vpop.f32.mrb[1].mxu1 }
 0x123   :  { %v149_v31 = vpop.f32.mrb[2].mxu0  ;;  %v198_v34 = vpop.f32.mrb[2].mxu1 }
 0x124   :  { %v555_v33 = vpop.f32.mrb[3].mxu0  ;;  %v212_v35 = vadd.f32 %v505_v28, %v196_v30  ;;  %v561_v36 = vpop.f32.mrb[3].mxu1 }
 0x126   :  { %v213_v37 = vmax.f32 %v212_v35, 0.0 }
 0x128   :  { %v271_v39 = vpack.c.bf16 %v213_v37, %v213_v37 }
 0x129   :  { %v264_v40 = vpop.f32.mrb[4].mxu0 }
 0x12a   :  { %v265_v41 = vadd.f32 %v506_v38, %v264_v40  ;;  %v566_v42 = vpop.f32.mrb[5].mxu0  ;;  %605 = vmatmul.mubr.bf16.vlgmr.msra.gmra.mrb[4].mxu1 %v271_v39 }
 0x12b   :  { %v267_v43 = vpop.f32.mrb[6].mxu0 }
 0x12c   :  { %v270_v44 = vmax.f32 %v265_v41, 0.0  ;;  %v567_v45 = vpop.f32.mrb[7].mxu0 }
 0x12e   :  { %v288_v46 = vpack.c.bf16 %v270_v44, %v270_v44 }
 0x130   :  { %585 = vmatmul.mubr.bf16.vlgmr.msra.gmra.mrb[8].mxu0 %v288_v46 }
 0x1fd   :  { %v475_v47 = vpop.f32.mrb[4].mxu1 }
 0x1fe   :  { %v606_v48 = vpop.f32.mrb[5].mxu1 }
 0x1ff   :  { %v478_v49 = vpop.f32.mrb[6].mxu1 }
 0x200   :  { %v607_v50 = vpop.f32.mrb[7].mxu1 }
 0x203   :  { %v387_v51 = vpop.f32.mrb[8].mxu0 }
 0x204   :  { %v476_v52 = vadd.f32 %v475_v47, %v387_v51  ;;  %v586_v53 = vpop.f32.mrb[9].mxu0 }
 0x205   :  { %v390_v54 = vpop.f32.mrb[10].mxu0 }
 0x206   :  { %v481_v56 = vmax.f32 %v476_v52, 0.0  ;;  %v587_v57 = vpop.f32.mrb[11].mxu0 }
 0x208   :  { %v489_v58 = vmul.f32 %v525_v55, %v481_v56 }
 0x20a   :  { %490 = vadd.xlane.f32.xlu0 %v489_v58 }
 0x297   :  { %v491_v59 = vpop.xlane.xlu0 %490 }
 0x298   :  { %493 = vst.msk [vmem:[%s960_s11] sm:$0xff] %vm492_vm2, %v491_v59 }
 0x299   :  { %498 = vsyncpa [#allocation3], 1 }
 0x29a   :  { %499 = vsyncpa [#allocation5], 1 }
 0x29b   :  { %500 = vsyncpa [#allocation8], 1 }

</bundles_post_ra>
